<compile_context>
chip_gen: v6e
topology: v6e:2x2x1
jax: 0.10.0
libtpu: 0.0.40
codegen_flags: <defaults>
</compile_context>

<pallas_src>
import jax
import jax.numpy as jnp
from jax.experimental import pallas as pl
from jax.experimental.pallas import tpu as pltpu

STATE_SIZE = 10
ACTION_SIZE = 4
FC1_UNITS = 64
FC2_UNITS = 64

TB = 512  # batch tile on the lane axis (multiple of 128; sweep 512..2048 if needed)


def qnetwork_kernel(x_ref, w1_ref, b1_ref, w2_ref, b2_ref, w3_ref, b3_ref, o_ref):
    # x tile: (STATE_SIZE, TB) bf16, feature-major (batch on the 128-lane axis).
    x = x_ref[...]
    # fc1: (64,10) @ (10,TB) -> f32 acc; bias + relu in f32.
    h1 = jnp.dot(w1_ref[...], x, preferred_element_type=jnp.float32)
    h1 = jnp.maximum(h1 + b1_ref[...], 0.0)
    # fc2: (64,64) @ (64,TB); feed MXU in bf16, accumulate f32.
    h2 = jnp.dot(w2_ref[...], h1.astype(w2_ref.dtype),
                 preferred_element_type=jnp.float32)
    h2 = jnp.maximum(h2 + b2_ref[...], 0.0)
    # fc3: (4,64) @ (64,TB); no activation.
    out = jnp.dot(w3_ref[...], h2.astype(w3_ref.dtype),
                  preferred_element_type=jnp.float32)
    o_ref[...] = (out + b3_ref[...]).astype(o_ref.dtype)


def qnetwork_forward(x, params, *, tb=TB):
    """x: (B, STATE_SIZE) float32. Returns (B, ACTION_SIZE) float32."""
    w1, b1, w2, b2, w3, b3 = params
    B = x.shape[0]
    n_tiles = pl.cdiv(B, tb)
    b_pad = n_tiles * tb

    # One transpose + zero-pad on the wrapper side -> feature-major bf16 input.
    x_fm = jnp.zeros((STATE_SIZE, b_pad), jnp.bfloat16)
    x_fm = x_fm.at[:, :B].set(x.T.astype(jnp.bfloat16))

    # Weights/biases: full-shape blocks with constant index_maps -> loaded once,
    # resident in VMEM across all grid steps.
    resident = lambda shape: pl.BlockSpec(shape, lambda i: (0, 0))

    out_fm = pl.pallas_call(
        qnetwork_kernel,
        out_shape=jax.ShapeDtypeStruct((ACTION_SIZE, b_pad), jnp.float32),
        grid_spec=pl.GridSpec(
            grid=(n_tiles,),
            in_specs=[
                pl.BlockSpec((STATE_SIZE, tb), lambda i: (0, i)),  # x tile, pipelined
                resident(w1.shape), resident(b1.shape),
                resident(w2.shape), resident(b2.shape),
                resident(w3.shape), resident(b3.shape),
            ],
            out_specs=pl.BlockSpec((ACTION_SIZE, tb), lambda i: (0, i)),
        ),
        compiler_params=pltpu.CompilerParams(
            dimension_semantics=("parallel",),  # v7x: shard batch tiles over 2 TCs
        ),
    )(x_fm, w1, b1, w2, b2, w3, b3)

    return out_fm[:, :B].T  # back to (B, ACTION_SIZE)


def init_params(key):
    # Mimics PyTorch nn.Linear default init: U(-1/sqrt(fan_in), 1/sqrt(fan_in)).
    # Weights stored (out_features, in_features) bf16; biases (out_features, 1) f32.
    def linear(key, fan_in, fan_out):
        kw, kb = jax.random.split(key)
        bound = 1.0 / jnp.sqrt(fan_in)
        w = jax.random.uniform(kw, (fan_out, fan_in), jnp.float32, -bound, bound)
        b = jax.random.uniform(kb, (fan_out, 1), jnp.float32, -bound, bound)
        return w.astype(jnp.bfloat16), b

    k1, k2, k3 = jax.random.split(key, 3)
    w1, b1 = linear(k1, STATE_SIZE, FC1_UNITS)
    w2, b2 = linear(k2, FC1_UNITS, FC2_UNITS)
    w3, b3 = linear(k3, FC2_UNITS, ACTION_SIZE)
    return (w1, b1, w2, b2, w3, b3)


def reference_forward(x, params):
    # Pure-jnp reference mirroring the kernel's numerics (bf16 matmul inputs,
    # f32 accumulation, f32 bias/ReLU).
    w1, b1, w2, b2, w3, b3 = params
    xb = x.T.astype(jnp.bfloat16)
    h1 = jnp.maximum(
        jnp.dot(w1, xb, preferred_element_type=jnp.float32) + b1, 0.0)
    h2 = jnp.maximum(
        jnp.dot(w2, h1.astype(jnp.bfloat16), preferred_element_type=jnp.float32) + b2, 0.0)
    out = jnp.dot(w3, h2.astype(jnp.bfloat16), preferred_element_type=jnp.float32) + b3
    return out.T


if __name__ == "__main__":
    key = jax.random.PRNGKey(0)
    kx, kp, kx2 = jax.random.split(key, 3)
    params = init_params(kp)

    # Small, spec-consistent example: batch of 2 state vectors of size 10.
    batch = 2
    x = jax.random.normal(kx, (batch, STATE_SIZE), jnp.float32)
    out = jax.block_until_ready(qnetwork_forward(x, params))
    ref = reference_forward(x, params)
    assert out.shape == (batch, ACTION_SIZE)
    assert jnp.allclose(out, ref, atol=1e-4, rtol=1e-4)

    # Also exercise multiple batch tiles (non-multiple of TB) to cover the grid path.
    batch2 = 2 * TB + 37
    x2 = jax.random.normal(kx2, (batch2, STATE_SIZE), jnp.float32)
    out2 = jax.block_until_ready(qnetwork_forward(x2, params))
    ref2 = reference_forward(x2, params)
    assert out2.shape == (batch2, ACTION_SIZE)
    assert jnp.allclose(out2, ref2, atol=1e-4, rtol=1e-4)

    print("KERNEL_OK")
</pallas_src>

<mosaic_0001>
module attributes {stable_mosaic.version = 11 : i64} {
  func.func @qnetwork_kernel(%arg0: i32, %arg1: memref<10x512xbf16, #tpu.memory_space<vmem>>, %arg2: memref<64x10xbf16, #tpu.memory_space<vmem>>, %arg3: memref<64x1xf32, #tpu.memory_space<vmem>>, %arg4: memref<64x64xbf16, #tpu.memory_space<vmem>>, %arg5: memref<64x1xf32, #tpu.memory_space<vmem>>, %arg6: memref<4x64xbf16, #tpu.memory_space<vmem>>, %arg7: memref<4x1xf32, #tpu.memory_space<vmem>>, %arg8: memref<4x512xf32, #tpu.memory_space<vmem>>) attributes {dimension_semantics = [#tpu.dimension_semantics<parallel>], iteration_bounds = array<i64: 1>, scalar_prefetch = 0 : i64, scratch_operands = 0 : i64, tpu.core_type = #tpu.core_type<tc>, window_params = [{transform_indices = @transform_0, window_bounds = array<i64: 10, 512>}, {pipeline_mode = #tpu.pipeline_mode<synchronous>, transform_indices = @transform_1, window_bounds = array<i64: 64, 10>}, {pipeline_mode = #tpu.pipeline_mode<synchronous>, transform_indices = @transform_2, window_bounds = array<i64: 64, 1>}, {pipeline_mode = #tpu.pipeline_mode<synchronous>, transform_indices = @transform_3, window_bounds = array<i64: 64, 64>}, {pipeline_mode = #tpu.pipeline_mode<synchronous>, transform_indices = @transform_4, window_bounds = array<i64: 64, 1>}, {pipeline_mode = #tpu.pipeline_mode<synchronous>, transform_indices = @transform_5, window_bounds = array<i64: 4, 64>}, {pipeline_mode = #tpu.pipeline_mode<synchronous>, transform_indices = @transform_6, window_bounds = array<i64: 4, 1>}, {transform_indices = @transform_7, window_bounds = array<i64: 4, 512>}]} {
    %c0 = arith.constant 0 : index
    %c0_0 = arith.constant 0 : index
    %0 = vector.load %arg1[%c0, %c0_0] : memref<10x512xbf16, #tpu.memory_space<vmem>>, vector<10x512xbf16>
    %c0_1 = arith.constant 0 : index
    %c0_2 = arith.constant 0 : index
    %1 = vector.load %arg2[%c0_1, %c0_2] : memref<64x10xbf16, #tpu.memory_space<vmem>>, vector<64x10xbf16>
    %cst = arith.constant dense<0.000000e+00> : vector<64x512xf32>
    %2 = tpu.matmul %1, %0, %cst {dimension_numbers = #tpu.dot_dimension_numbers<[1], [0], [0], [1], [0, 0, 1, 1], [], []>} : vector<64x10xbf16>, vector<10x512xbf16>, vector<64x512xf32> -> vector<64x512xf32>
    %c0_3 = arith.constant 0 : index
    %c0_4 = arith.constant 0 : index
    %3 = vector.load %arg3[%c0_3, %c0_4] : memref<64x1xf32, #tpu.memory_space<vmem>>, vector<64x1xf32>
    %4 = vector.broadcast %3 : vector<64x1xf32> to vector<64x512xf32>
    %5 = arith.addf %2, %4 : vector<64x512xf32>
    %cst_5 = arith.constant 0.000000e+00 : f32
    %6 = vector.broadcast %cst_5 : f32 to vector<64x512xf32>
    %7 = arith.maximumf %5, %6 : vector<64x512xf32>
    %c0_6 = arith.constant 0 : index
    %c0_7 = arith.constant 0 : index
    %8 = vector.load %arg4[%c0_6, %c0_7] : memref<64x64xbf16, #tpu.memory_space<vmem>>, vector<64x64xbf16>
    %9 = arith.truncf %7 : vector<64x512xf32> to vector<64x512xbf16>
    %cst_8 = arith.constant dense<0.000000e+00> : vector<64x512xf32>
    %10 = tpu.matmul %8, %9, %cst_8 {dimension_numbers = #tpu.dot_dimension_numbers<[1], [0], [0], [1], [0, 0, 1, 1], [], []>} : vector<64x64xbf16>, vector<64x512xbf16>, vector<64x512xf32> -> vector<64x512xf32>
    %c0_9 = arith.constant 0 : index
    %c0_10 = arith.constant 0 : index
    %11 = vector.load %arg5[%c0_9, %c0_10] : memref<64x1xf32, #tpu.memory_space<vmem>>, vector<64x1xf32>
    %12 = vector.broadcast %11 : vector<64x1xf32> to vector<64x512xf32>
    %13 = arith.addf %10, %12 : vector<64x512xf32>
    %cst_11 = arith.constant 0.000000e+00 : f32
    %14 = vector.broadcast %cst_11 : f32 to vector<64x512xf32>
    %15 = arith.maximumf %13, %14 : vector<64x512xf32>
    %c0_12 = arith.constant 0 : index
    %c0_13 = arith.constant 0 : index
    %16 = vector.load %arg6[%c0_12, %c0_13] : memref<4x64xbf16, #tpu.memory_space<vmem>>, vector<4x64xbf16>
    %17 = arith.truncf %15 : vector<64x512xf32> to vector<64x512xbf16>
    %cst_14 = arith.constant dense<0.000000e+00> : vector<4x512xf32>
    %18 = tpu.matmul %16, %17, %cst_14 {dimension_numbers = #tpu.dot_dimension_numbers<[1], [0], [0], [1], [0, 0, 1, 1], [], []>} : vector<4x64xbf16>, vector<64x512xbf16>, vector<4x512xf32> -> vector<4x512xf32>
    %c0_15 = arith.constant 0 : index
    %c0_16 = arith.constant 0 : index
    %19 = vector.load %arg7[%c0_15, %c0_16] : memref<4x1xf32, #tpu.memory_space<vmem>>, vector<4x1xf32>
    %20 = vector.broadcast %19 : vector<4x1xf32> to vector<4x512xf32>
    %21 = arith.addf %18, %20 : vector<4x512xf32>
    %c0_17 = arith.constant 0 : index
    %c0_18 = arith.constant 0 : index
    %22 = vector.load %arg8[%c0_17, %c0_18] : memref<4x512xf32, #tpu.memory_space<vmem>>, vector<4x512xf32>
    tpu.vector_store %arg8[%c0_17, %c0_18], %21 {strides = array<i32>} : memref<4x512xf32, #tpu.memory_space<vmem>>, vector<4x512xf32>,
    return
  }
  func.func @transform_0(%arg0: i32) -> (i32, i32) {
    %c0_i32 = arith.constant 0 : i32
    %c0_i32_0 = arith.constant 0 : i32
    return %c0_i32, %arg0 : i32, i32
  }
  func.func @transform_1(%arg0: i32) -> (i32, i32) {
    %c0_i32 = arith.constant 0 : i32
    %c0_i32_0 = arith.constant 0 : i32
    %c0_i32_1 = arith.constant 0 : i32
    return %c0_i32, %c0_i32_0 : i32, i32
  }
  func.func @transform_2(%arg0: i32) -> (i32, i32) {
    %c0_i32 = arith.constant 0 : i32
    %c0_i32_0 = arith.constant 0 : i32
    %c0_i32_1 = arith.constant 0 : i32
    return %c0_i32, %c0_i32_0 : i32, i32
  }
  func.func @transform_3(%arg0: i32) -> (i32, i32) {
    %c0_i32 = arith.constant 0 : i32
    %c0_i32_0 = arith.constant 0 : i32
    %c0_i32_1 = arith.constant 0 : i32
    return %c0_i32, %c0_i32_0 : i32, i32
  }
  func.func @transform_4(%arg0: i32) -> (i32, i32) {
    %c0_i32 = arith.constant 0 : i32
    %c0_i32_0 = arith.constant 0 : i32
    %c0_i32_1 = arith.constant 0 : i32
    return %c0_i32, %c0_i32_0 : i32, i32
  }
  func.func @transform_5(%arg0: i32) -> (i32, i32) {
    %c0_i32 = arith.constant 0 : i32
    %c0_i32_0 = arith.constant 0 : i32
    %c0_i32_1 = arith.constant 0 : i32
    return %c0_i32, %c0_i32_0 : i32, i32
  }
  func.func @transform_6(%arg0: i32) -> (i32, i32) {
    %c0_i32 = arith.constant 0 : i32
    %c0_i32_0 = arith.constant 0 : i32
    %c0_i32_1 = arith.constant 0 : i32
    return %c0_i32, %c0_i32_0 : i32, i32
  }
  func.func @transform_7(%arg0: i32) -> (i32, i32) {
    %c0_i32 = arith.constant 0 : i32
    %c0_i32_0 = arith.constant 0 : i32
    return %c0_i32, %arg0 : i32, i32
  }
}

</mosaic_0001>

<bundles_post_ra>
// kernel: tpu_custom_call.1
= control target key start
LH: loop header
LB: loop body
LE: loop exit
PB: predicated region body
PF: predicated region fallthrough
CT: control target
= control target key end

     0   :  { %vm137_vm0 = vcmask 1044480   ;;  %v815_v3 = vmov 0   ;;  %vm124_vm1 = vcmask 80896   ;;  %s1126_s0 = inlined_call_operand.vmem [shape: bf16[10,512], index: 0, kind: input, shape index: {}]   ;;  %s1127_s1 = inlined_call_operand.vmem [shape: bf16[64,10], index: 1, kind: input, shape index: {}]   ;;  %s1128_s2 = inlined_call_operand.vmem [shape: f32[64,1], index: 2, kind: input, shape index: {}]   ;;  %s1129_s3 = inlined_call_operand.vmem [shape: bf16[64,64], index: 3, kind: input, shape index: {}]   ;;  %s1130_s4 = inlined_call_operand.vmem [shape: f32[64,1], index: 4, kind: input, shape index: {}]   ;;  %s1131_s5 = inlined_call_operand.vmem [shape: bf16[4,64], index: 5, kind: input, shape index: {}]   ;;  %s1132_s6 = inlined_call_operand.vmem [shape: f32[4,1], index: 6, kind: input, shape index: {}]   ;;  %s1133_s7 = inlined_call_operand.hbm [shape: f32[4,512], index: 7, kind: output, shape index: {}]  }
   0x1   :  { %v779_v0 = vld [vmem:[%s1126_s0 + $0x4] ss:$16 sps:$4 sm:$0x1f]   ;;  %v781_v1 = vld [vmem:[%s1126_s0 + $0xc] ss:$16 sps:$4 sm:$0x1f]   ;;  %182 = vmatprep.mubr.bf16.mxu0 %v815_v3  ;;  %255 = vmatprep.mubr.bf16.mxu1 %v815_v3 }
   0x2   :  { %751 = vmatprep.subr.msk.bf16.mxu0 %vm137_vm0, %v779_v0  ;;  %v783_v2 = vld [vmem:[%s1126_s0] ss:$16 sps:$4 sm:$0x1f]   ;;  %v784_v4 = vld [vmem:[%s1126_s0 + $0x8] ss:$16 sps:$4 sm:$0x1f]   ;;  %777 = vset.pattern.permute.xlu0 %v815_v3 }
   0x3   :  { %756 = vmatprep.subr.msk.bf16.mxu1 %vm137_vm0, %v781_v1  ;;  %v139_v5 = vsel %vm137_vm0, %v783_v2, 0  ;;  %v785_v6 = vld [vmem:[%s1127_s1] sm:$0xff]   ;;  %778 = vset.pattern.permute.xlu1 %v815_v3  ;;  %v145_v7 = vsel %vm137_vm0, %v784_v4, 0  ;;  %v46_v8 = vld [vmem:[%s1128_s2 + $0x30] sm:$0xff]  ;;  %v47_v10 = vld [vmem:[%s1128_s2 + $0x38] sm:$0xff] }
   0x4   :  { %165 = vmatpush1.bf16.msra.mxu0 %v139_v5  ;;  %238 = vmatpush1.bf16.msra.mxu1 %v145_v7  ;;  %v44_v9 = vld [vmem:[%s1128_s2 + $0x20] sm:$0xff]  ;;  %v45_v11 = vld [vmem:[%s1128_s2 + $0x28] sm:$0xff]  ;;  %v42_v13 = vld [vmem:[%s1128_s2 + $0x10] sm:$0xff] }
   0x5   :  { %80 = vperm.xlu0 %777, %v46_v8   ;;  %70 = vperm.xlu1 %778, %v44_v9   ;;  %v786_v12 = vld [vmem:[%s1127_s1 + $0x8] sm:$0xff]   ;;  %v43_v14 = vld [vmem:[%s1128_s2 + $0x18] sm:$0xff] }
   0x7   :  { %752 = vmatmul.mubr.msk.bf16.vlgmr.msra.gmra.mxu0 %vm124_vm1, %v785_v6  ;;  %757 = vmatmul.mubr.msk.bf16.vlgmr.msra.gmra.mxu1 %vm124_vm1, %v785_v6 }
   0x8   :  { %192 = vmatprep.mubr.bf16.mxu0 %v815_v3  ;;  %265 = vmatprep.mubr.bf16.mxu1 %v815_v3 }
   0x9   :  { %85 = vperm.xlu0 %777, %v47_v10   ;;  %75 = vperm.xlu1 %778, %v45_v11  }
   0xa   :  { %12 = vsyncpa [#allocation3], 0  ;;  %v40_v15 = vld [vmem:[%s1128_s2] sm:$0xff]  ;;  %v41_v16 = vld [vmem:[%s1128_s2 + $0x8] sm:$0xff]  ;;  %vm420_vm2 = vcmask 523264   ;;  %s816_s8 = smov [#allocation2]  }
   0xb   :  { %v787_v17 = vld [vmem:[%s1127_s1 + $0x10] sm:$0xff]   ;;  %v359_v19 = vld [vmem:[%s1130_s4 + $0x38] sm:$0xff]  ;;  %v356_v20 = vld [vmem:[%s1130_s4 + $0x20] sm:$0xff]  ;;  %s735_s9 = sshll.u32 %s816_s8, 4  ;;  %s736_s9 = int_to_ptr.vmem [resolvable:$true] %s735_s9 }
   0xc   :  { %v358_v18 = vld [vmem:[%s1130_s4 + $0x30] sm:$0xff]  ;;  %v357_v21 = vld [vmem:[%s1130_s4 + $0x28] sm:$0xff]  ;;  %v788_v22 = vld [vmem:[%s1127_s1 + $0x18] sm:$0xff]   ;;  %p798_p1 = scmp.lt.s32.totalorder %s736_s9, %s736_s9 }
   0xd   :  { %60 = vperm.xlu0 %777, %v42_v13   ;;  %65 = vperm.xlu1 %778, %v43_v14   ;;  %v354_v23 = vld [vmem:[%s1130_s4 + $0x10] sm:$0xff]  ;;  %v355_v24 = vld [vmem:[%s1130_s4 + $0x18] sm:$0xff]  ;;  %v352_v25 = vld [vmem:[%s1130_s4] sm:$0xff] }
   0xe   :  { %v353_v26 = vld [vmem:[%s1130_s4 + $0x8] sm:$0xff]  ;;  %v628_v27 = vld [vmem:[%s1132_s6] sm:$0xf] }
   0xf   :  { %753 = vmatmul.mubr.msk.bf16.gmra.mxu0 %vm124_vm1, %v786_v12  ;;  %758 = vmatmul.mubr.msk.bf16.gmra.mxu1 %vm124_vm1, %v786_v12 }
  0x10   :  { %202 = vmatprep.mubr.bf16.mxu0 %v815_v3  ;;  %275 = vmatprep.mubr.bf16.mxu1 %v815_v3 }
  0x11   :  { %50 = vperm.xlu0 %777, %v40_v15   ;;  %55 = vperm.xlu1 %778, %v41_v16  }
  0x15   :  { %392 = vperm.xlu0 %777, %v358_v18   ;;  %397 = vperm.xlu1 %778, %v359_v19  }
  0x17   :  { %754 = vmatmul.mubr.msk.bf16.gmra.mxu0 %vm124_vm1, %v787_v17  ;;  %759 = vmatmul.mubr.msk.bf16.gmra.mxu1 %vm124_vm1, %v787_v17 }
  0x18   :  { %212 = vmatprep.mubr.bf16.mxu0 %v815_v3  ;;  %285 = vmatprep.mubr.bf16.mxu1 %v815_v3 }
  0x19   :  { %382 = vperm.xlu0 %777, %v356_v20   ;;  %387 = vperm.xlu1 %778, %v357_v21  }
  0x1d   :  { %372 = vperm.xlu0 %777, %v354_v23   ;;  %377 = vperm.xlu1 %778, %v355_v24  }
  0x1f   :  { %755 = vmatmul.mubr.msk.bf16.gmra.mxu0 %vm124_vm1, %v788_v22  ;;  %760 = vmatmul.mubr.msk.bf16.gmra.mxu1 %vm124_vm1, %v788_v22 }
  0x20   :  { %465 = vmatprep.mubr.bf16.mxu0 %v815_v3  ;;  %538 = vmatprep.mubr.bf16.mxu1 %v815_v3 }
  0x21   :  { %362 = vperm.xlu0 %777, %v352_v25   ;;  %367 = vperm.xlu1 %778, %v353_v26  }
  0x25   :  { %631 = vperm.xlu0 %777, %v628_v27  }
  0x80   :  { %v81_v35 = vpop.permute.xlu0 %80  ;;  %v960_v37 = vpop.permute.xlu1 %70 }
  0x84   :  { %v86_v43 = vpop.permute.xlu0 %85  ;;  %v76_v45 = vpop.permute.xlu1 %75 }
  0x88   :  { %v966_v51 = vpop.permute.xlu0 %60  ;;  %v66_v53 = vpop.permute.xlu1 %65 }
  0x8c   :  { %v968_v59 = vpop.permute.xlu0 %50  ;;  %v976_v63 = vpop.permute.xlu1 %55 }
  0xc7   :  { %v952_v28 = vpop.f32.mrf.mxu0  ;;  %v954_v29 = vpop.f32.mrf.mxu1 }
  0xc9   :  { %v186_v30 = vpop.f32.mrf.mxu0  ;;  %v259_v31 = vpop.f32.mrf.mxu1 }
  0xca   :  { %v971_v61 = vadd.f32 %v186_v30, %v968_v59  ;;  %v974_v62 = vadd.f32 %v259_v31, %v968_v59 }
  0xcb   :  { %v956_v32 = vpop.f32.mrf.mxu0  ;;  %v958_v33 = vpop.f32.mrf.mxu1 }
  0xcd   :  { %v190_v34 = vpop.f32.mrf.mxu0  ;;  %v263_v36 = vpop.f32.mrf.mxu1 }
  0xce   :  { %v979_v1 = vadd.f32 %v190_v34, %v976_v63  ;;  %v982_v2 = vadd.f32 %v263_v36, %v976_v63 }
  0xcf   :  { %v962_v38 = vpop.f32.mrf.mxu0  ;;  %v964_v39 = vpop.f32.mrf.mxu1 }
  0xd1   :  { %v196_v40 = vpop.f32.mrf.mxu0  ;;  %v269_v41 = vpop.f32.mrf.mxu1 }
  0xd2   :  { %v985_v4 = vadd.f32 %v196_v40, %v966_v51  ;;  %v988_v5 = vadd.f32 %v269_v41, %v966_v51 }
  0xd3   :  { %v198_v42 = vpop.f32.mrf.mxu0  ;;  %v271_v44 = vpop.f32.mrf.mxu1 }
  0xd4   :  { %v990_v7 = vadd.f32 %v198_v42, %v66_v53  ;;  %v992_v8 = vadd.f32 %v271_v44, %v66_v53 }
  0xd5   :  { %v200_v46 = vpop.f32.mrf.mxu0  ;;  %v273_v47 = vpop.f32.mrf.mxu1 }
  0xd6   :  { %v994_v9 = vadd.f32 %v200_v46, %v66_v53  ;;  %v996_v10 = vadd.f32 %v273_v47, %v66_v53 }
  0xd7   :  { %v204_v48 = vpop.f32.mrf.mxu0  ;;  %v277_v49 = vpop.f32.mrf.mxu1 }
  0xd8   :  { %v205_v12 = vadd.f32 %v204_v48, %v960_v37  ;;  %v278_v53 = vadd.f32 %v277_v49, %v960_v37  ;;  %v189_v49 = vadd.f32 %v956_v32, %v976_v63  ;;  %v310_v32 = vmax.f32 %v992_v8, 0.0 }
  0xd9   :  { %v206_v50 = vpop.f32.mrf.mxu0  ;;  %v279_v52 = vpop.f32.mrf.mxu1 }
  0xda   :  { %v207_v22 = vadd.f32 %v206_v50, %v960_v37  ;;  %v280_v23 = vadd.f32 %v279_v52, %v960_v37 }
  0xdb   :  { %v208_v54 = vpop.f32.mrf.mxu0  ;;  %v281_v55 = vpop.f32.mrf.mxu1 }
  0xdc   :  { %v209_v27 = vadd.f32 %v208_v54, %v76_v45  ;;  %v282_v30 = vadd.f32 %v281_v55, %v76_v45  ;;  %v313_v50 = vmax.f32 %v207_v22, 0.0 }
  0xdd   :  { %v210_v56 = vpop.f32.mrf.mxu0  ;;  %v283_v57 = vpop.f32.mrf.mxu1 }
  0xde   :  { %v211_v13 = vadd.f32 %v210_v56, %v76_v45  ;;  %v284_v17 = vadd.f32 %v283_v57, %v76_v45  ;;  %v316_v57 = vmax.f32 %v209_v27, 0.0  ;;  %v309_v45 = vmax.f32 %v994_v9, 0.0 }
  0xdf   :  { %v214_v58 = vpop.f32.mrf.mxu0  ;;  %v287_v60 = vpop.f32.mrf.mxu1  ;;  %v305_v9 = vmax.f32 %v985_v4, 0.0  ;;  %v303_v4 = vmax.f32 %v982_v2, 0.0 }
  0xe0   :  { %v215_v18 = vadd.f32 %v214_v58, %v81_v35  ;;  %v288_v24 = vadd.f32 %v287_v60, %v81_v35  ;;  %v317_v36 = vmax.f32 %v211_v13, 0.0  ;;  %v319_v44 = vmax.f32 %v284_v17, 0.0 }
  0xe1   :  { %v216_v0 = vpop.f32.mrf.mxu0  ;;  %v289_v6 = vpop.f32.mrf.mxu1  ;;  %v268_v13 = vadd.f32 %v964_v39, %v966_v51  ;;  %v341_v17 = vpack.c.bf16 %v309_v45, %v305_v9 }
  0xe2   :  { %v217_v14 = vadd.f32 %v216_v0, %v81_v35  ;;  %v290_v19 = vadd.f32 %v289_v6, %v81_v35  ;;  %v320_v46 = vmax.f32 %v215_v18, 0.0  ;;  %v322_v56 = vmax.f32 %v288_v24, 0.0  ;;  %v791_v24 = vld [vmem:[%s1129_s3 + $0x10] sm:$0xff]  }
  0xe3   :  { %v218_v11 = vpop.f32.mrf.mxu0  ;;  %v291_v16 = vpop.f32.mrf.mxu1  ;;  %v315_v35 = vmax.f32 %v280_v23, 0.0  ;;  %v345_v55 = vpack.c.bf16 %v317_v36, %v313_v50  ;;  %v195_v0 = vadd.f32 %v962_v38, %v966_v51  ;;  %v311_v6 = vmax.f32 %v996_v10, 0.0 }
  0xe4   :  { %v219_v15 = vadd.f32 %v218_v11, %v86_v43  ;;  %v292_v20 = vadd.f32 %v291_v16, %v86_v43  ;;  %v321_v40 = vmax.f32 %v217_v14, 0.0  ;;  %v323_v47 = vmax.f32 %v290_v19, 0.0 }
  0xe5   :  { %v220_v21 = vpop.f32.mrf.mxu0  ;;  %v293_v26 = vpop.f32.mrf.mxu1  ;;  %v312_v11 = vmax.f32 %v205_v12, 0.0  ;;  %v347_v37 = vpack.c.bf16 %v319_v44, %v315_v35  ;;  %v314_v14 = vmax.f32 %v278_v53, 0.0  ;;  %v262_v38 = vadd.f32 %v958_v33, %v976_v63 }
  0xe6   :  { %v221_v25 = vadd.f32 %v220_v21, %v86_v43  ;;  %v324_v31 = vmax.f32 %v219_v15, 0.0  ;;  %v294_v34 = vadd.f32 %v293_v26, %v86_v43  ;;  %v326_v41 = vmax.f32 %v292_v20, 0.0  ;;  %v398_v44 = vpop.permute.xlu1 %397 }
  0xe7   :  { %v318_v43 = vmax.f32 %v282_v30, 0.0  ;;  %v307_v10 = vmax.f32 %v988_v5, 0.0  ;;  %v308_v12 = vmax.f32 %v990_v7, 0.0  ;;  %v344_v15 = vpack.c.bf16 %v316_v57, %v312_v11 }
  0xe8   :  { %v325_v42 = vmax.f32 %v221_v25, 0.0  ;;  %v327_v48 = vmax.f32 %v294_v34, 0.0  ;;  %v348_v58 = vpack.c.bf16 %v324_v31, %v320_v46  ;;  %v350_v60 = vpack.c.bf16 %v326_v41, %v322_v56  ;;  %v792_v25 = vld [vmem:[%s1129_s3 + $0x18] sm:$0xff]   ;;  %v393_v41 = vpop.permute.xlu0 %392 }
  0xe9   :  { %v301_v16 = vmax.f32 %v979_v1, 0.0  ;;  %v346_v39 = vpack.c.bf16 %v318_v43, %v314_v14  ;;  %v185_v51 = vadd.f32 %v952_v28, %v968_v59  ;;  %v304_v18 = vmax.f32 %v195_v0, 0.0 }
  0xea   :  { %v349_v52 = vpack.c.bf16 %v325_v42, %v321_v40  ;;  %v351_v54 = vpack.c.bf16 %v327_v48, %v323_v47  ;;  %v343_v19 = vpack.c.bf16 %v311_v6, %v307_v10  ;;  %v258_v33 = vadd.f32 %v954_v29, %v968_v59 }
  0xeb   :  { %v297_v63 = vmax.f32 %v971_v61, 0.0  ;;  %v306_v5 = vmax.f32 %v268_v13, 0.0  ;;  %v299_v1 = vmax.f32 %v974_v62, 0.0  ;;  %v300_v7 = vmax.f32 %v189_v49, 0.0  ;;  %v789_v61 = vld [vmem:[%s1129_s3] sm:$0xff]   ;;  %v790_v62 = vld [vmem:[%s1129_s3 + $0x8] sm:$0xff]  }
  0xec   :  { %441 = vmatprep.subr.bf16.mxu0 %v349_v52  ;;  %514 = vmatprep.subr.bf16.mxu1 %v351_v54  ;;  %v340_v8 = vpack.c.bf16 %v308_v12, %v304_v18  ;;  %v302_v20 = vmax.f32 %v262_v38, 0.0  ;;  %v296_v2 = vmax.f32 %v185_v51, 0.0  ;;  %v298_v23 = vmax.f32 %v258_v33, 0.0  ;;  %v383_v50 = vpop.permute.xlu0 %382  ;;  %v388_v52 = vpop.permute.xlu1 %387 }
  0xed   :  { %442 = vmatpush1.bf16.msra.mxu0 %v348_v58  ;;  %515 = vmatpush1.bf16.msra.mxu1 %v350_v60  ;;  %v337_v28 = vpack.c.bf16 %v301_v16, %v297_v63  ;;  %v342_v21 = vpack.c.bf16 %v310_v32, %v306_v5  ;;  %v339_v22 = vpack.c.bf16 %v303_v4, %v299_v1 }
  0xee   :  { %443 = vmatprep.subr.bf16.mxu0 %v345_v55  ;;  %516 = vmatprep.subr.bf16.mxu1 %v347_v37  ;;  %v336_v29 = vpack.c.bf16 %v300_v7, %v296_v2  ;;  %v338_v59 = vpack.c.bf16 %v302_v20, %v298_v23 }
  0xf0   :  { %v1064_v43 = vpop.permute.xlu0 %372  ;;  %v378_v60 = vpop.permute.xlu1 %377 }
  0xf1   :  { %444 = vmatpush1.bf16.msra.mxu0 %v344_v15  ;;  %517 = vmatpush1.bf16.msra.mxu1 %v346_v39 }
  0xf2   :  { %445 = vmatprep.subr.bf16.mxu0 %v341_v17  ;;  %518 = vmatprep.subr.bf16.mxu1 %v343_v19 }
  0xf4   :  { %v1066_v13 = vpop.permute.xlu0 %362  ;;  %v1068_v14 = vpop.permute.xlu1 %367 }
  0xf5   :  { %446 = vmatpush1.bf16.msra.mxu0 %v340_v8  ;;  %519 = vmatpush1.bf16.msra.mxu1 %v342_v21 }
  0xf6   :  { %447 = vmatprep.subr.bf16.mxu0 %v337_v28  ;;  %520 = vmatprep.subr.bf16.mxu1 %v339_v22 }
  0xf9   :  { %448 = vmatpush1.bf16.msra.mxu0 %v336_v29  ;;  %521 = vmatpush1.bf16.msra.mxu1 %v338_v59 }
  0xfc   :  { %765 = vmatmul.mubr.msk.bf16.vlgmr.msra.gmra.mxu0 %vm420_vm2, %v789_v61  ;;  %769 = vmatmul.mubr.msk.bf16.vlgmr.msra.gmra.mxu1 %vm420_vm2, %v789_v61 }
  0xfd   :  { %475 = vmatprep.mubr.bf16.mxu0 %v815_v3  ;;  %548 = vmatprep.mubr.bf16.mxu1 %v815_v3 }
 0x104   :  { %766 = vmatmul.mubr.msk.bf16.gmra.mxu0 %vm420_vm2, %v790_v62  ;;  %770 = vmatmul.mubr.msk.bf16.gmra.mxu1 %vm420_vm2, %v790_v62 }
 0x105   :  { %485 = vmatprep.mubr.bf16.mxu0 %v815_v3  ;;  %558 = vmatprep.mubr.bf16.mxu1 %v815_v3 }
 0x10c   :  { %767 = vmatmul.mubr.msk.bf16.gmra.mxu0 %vm420_vm2, %v791_v24  ;;  %771 = vmatmul.mubr.msk.bf16.gmra.mxu1 %vm420_vm2, %v791_v24 }
 0x10d   :  { %495 = vmatprep.mubr.bf16.mxu0 %v815_v3  ;;  %568 = vmatprep.mubr.bf16.mxu1 %v815_v3 }
 0x114   :  { %768 = vmatmul.mubr.msk.bf16.gmra.mxu0 %vm420_vm2, %v792_v25  ;;  %772 = vmatmul.mubr.msk.bf16.gmra.mxu1 %vm420_vm2, %v792_v25 }
 0x115   :  { %669 = vmatprep.mubr.bf16.mxu0 %v815_v3  ;;  %710 = vmatprep.mubr.bf16.mxu1 %v815_v3 }
 0x1bc   :  { %v1052_v26 = vpop.f32.mrf.mxu0  ;;  %v1054_v27 = vpop.f32.mrf.mxu1 }
 0x1be   :  { %v469_v30 = vpop.f32.mrf.mxu0  ;;  %v542_v31 = vpop.f32.mrf.mxu1 }
 0x1bf   :  { %v1071_v38 = vadd.f32 %v469_v30, %v1066_v13  ;;  %v1074_v10 = vadd.f32 %v542_v31, %v1066_v13 }
 0x1c0   :  { %v1056_v34 = vpop.f32.mrf.mxu0  ;;  %v1058_v36 = vpop.f32.mrf.mxu1 }
 0x1c2   :  { %v473_v40 = vpop.f32.mrf.mxu0  ;;  %v546_v42 = vpop.f32.mrf.mxu1 }
 0x1c3   :  { %v1077_v15 = vadd.f32 %v473_v40, %v1068_v14  ;;  %v1080_v16 = vadd.f32 %v546_v42, %v1068_v14 }
 0x1c4   :  { %v1060_v46 = vpop.f32.mrf.mxu0  ;;  %v1062_v47 = vpop.f32.mrf.mxu1 }
 0x1c6   :  { %v479_v48 = vpop.f32.mrf.mxu0  ;;  %v552_v3 = vpop.f32.mrf.mxu1 }
 0x1c7   :  { %v1083_v32 = vadd.f32 %v479_v48, %v1064_v43  ;;  %v1086_v17 = vadd.f32 %v552_v3, %v1064_v43 }
 0x1c8   :  { %v481_v53 = vpop.f32.mrf.mxu0  ;;  %v554_v56 = vpop.f32.mrf.mxu1 }
 0x1c9   :  { %v1088_v51 = vadd.f32 %v481_v53, %v378_v60  ;;  %v1090_v4 = vadd.f32 %v554_v56, %v378_v60 }
 0x1ca   :  { %v483_v35 = vpop.f32.mrf.mxu0  ;;  %v556_v57 = vpop.f32.mrf.mxu1 }
 0x1cb   :  { %v1092_v18 = vadd.f32 %v483_v35, %v378_v60  ;;  %v1094_v19 = vadd.f32 %v556_v57, %v378_v60 }
 0x1cc   :  { %v487_v58 = vpop.f32.mrf.mxu0  ;;  %v560_v54 = vpop.f32.mrf.mxu1 }
 0x1cd   :  { %v488_v63 = vadd.f32 %v487_v58, %v383_v50  ;;  %v561_v58 = vadd.f32 %v560_v54, %v383_v50  ;;  %v472_v54 = vadd.f32 %v1056_v34, %v1068_v14  ;;  %v593_v34 = vmax.f32 %v1090_v4, 0.0 }
 0x1ce   :  { %v489_v45 = vpop.f32.mrf.mxu0  ;;  %v562_v55 = vpop.f32.mrf.mxu1 }
 0x1cf   :  { %v490_v23 = vadd.f32 %v489_v45, %v383_v50  ;;  %v563_v29 = vadd.f32 %v562_v55, %v383_v50 }
 0x1d0   :  { %v491_v0 = vpop.f32.mrf.mxu0  ;;  %v564_v6 = vpop.f32.mrf.mxu1 }
 0x1d1   :  { %v492_v24 = vadd.f32 %v491_v0, %v388_v52  ;;  %v565_v25 = vadd.f32 %v564_v6, %v388_v52  ;;  %v596_v60 = vmax.f32 %v490_v23, 0.0  ;;  %v598_v55 = vmax.f32 %v563_v29, 0.0 }
 0x1d2   :  { %v493_v11 = vpop.f32.mrf.mxu0  ;;  %v566_v37 = vpop.f32.mrf.mxu1 }
 0x1d3   :  { %v494_v5 = vadd.f32 %v493_v11, %v388_v52  ;;  %v567_v20 = vadd.f32 %v566_v37, %v388_v52  ;;  %v592_v52 = vmax.f32 %v1092_v18, 0.0  ;;  %v601_v0 = vmax.f32 %v565_v25, 0.0 }
 0x1d4   :  { %v497_v49 = vpop.f32.mrf.mxu0  ;;  %v570_v9 = vpop.f32.mrf.mxu1  ;;  %v588_v18 = vmax.f32 %v1083_v32, 0.0  ;;  %v586_v32 = vmax.f32 %v1080_v16, 0.0 }
 0x1d5   :  { %v498_v28 = vadd.f32 %v497_v49, %v393_v41  ;;  %v571_v59 = vadd.f32 %v570_v9, %v393_v41  ;;  %v600_v40 = vmax.f32 %v494_v5, 0.0  ;;  %v602_v53 = vmax.f32 %v567_v20, 0.0 }
 0x1d6   :  { %v499_v12 = vpop.f32.mrf.mxu0  ;;  %v572_v39 = vpop.f32.mrf.mxu1  ;;  %v478_v9 = vadd.f32 %v1060_v46, %v1064_v43  ;;  %v597_v5 = vmax.f32 %v561_v58, 0.0  ;;  %v545_v46 = vadd.f32 %v1058_v36, %v1068_v14  ;;  %v541_v36 = vadd.f32 %v1054_v27, %v1066_v13 }
 0x1d7   :  { %v500_v1 = vadd.f32 %v499_v12, %v393_v41  ;;  %v573_v21 = vadd.f32 %v572_v39, %v393_v41  ;;  %v603_v56 = vmax.f32 %v498_v28, 0.0  ;;  %v605_v11 = vmax.f32 %v571_v59, 0.0  ;;  %v632_v59 = vpop.permute.xlu0 %631 }
 0x1d8   :  { %v501_v33 = vpop.f32.mrf.mxu0  ;;  %v574_v8 = vpop.f32.mrf.mxu1  ;;  %v599_v41 = vmax.f32 %v492_v24, 0.0  ;;  %v594_v12 = vmax.f32 %v1094_v19, 0.0  ;;  %v595_v39 = vmax.f32 %v488_v63, 0.0  ;;  %v623_v50 = vpack.c.bf16 %v602_v53, %v598_v55 }
 0x1d9   :  { %v502_v7 = vadd.f32 %v501_v33, %v398_v44  ;;  %v575_v2 = vadd.f32 %v574_v8, %v398_v44  ;;  %v604_v42 = vmax.f32 %v500_v1, 0.0  ;;  %v606_v35 = vmax.f32 %v573_v21, 0.0 }
 0x1da   :  { %v503_v22 = vpop.f32.mrf.mxu0  ;;  %v576_v62 = vpop.f32.mrf.mxu1  ;;  %v551_v33 = vadd.f32 %v1062_v47, %v1064_v43  ;;  %v590_v19 = vmax.f32 %v1086_v17, 0.0  ;;  %v591_v63 = vmax.f32 %v1088_v51, 0.0  ;;  %v620_v1 = vpack.c.bf16 %v599_v41, %v595_v39 }
 0x1db   :  { %v504_v61 = vadd.f32 %v503_v22, %v398_v44  ;;  %v607_v30 = vmax.f32 %v502_v7, 0.0  ;;  %v577_v31 = vadd.f32 %v576_v62, %v398_v44  ;;  %v609_v48 = vmax.f32 %v575_v2, 0.0 }
 0x1dc   :  { %v621_v44 = vpack.c.bf16 %v600_v40, %v596_v60  ;;  %v584_v7 = vmax.f32 %v1077_v15, 0.0  ;;  %v617_v8 = vpack.c.bf16 %v592_v52, %v588_v18  ;;  %v622_v47 = vpack.c.bf16 %v601_v0, %v597_v5 }
 0x1dd   :  { %v608_v3 = vmax.f32 %v504_v61, 0.0  ;;  %v610_v57 = vmax.f32 %v577_v31, 0.0  ;;  %v624_v37 = vpack.c.bf16 %v607_v30, %v603_v56  ;;  %v626_v6 = vpack.c.bf16 %v609_v48, %v605_v11 }
 0x1de   :  { %v468_v43 = vadd.f32 %v1052_v26, %v1066_v13  ;;  %v587_v20 = vmax.f32 %v478_v9, 0.0  ;;  %v619_v28 = vpack.c.bf16 %v594_v12, %v590_v19  ;;  %v580_v14 = vmax.f32 %v1071_v38, 0.0  ;;  %v611_v38 = vld [vmem:[%s1131_s5] sm:$0x3]  ;;  %s793_s5 = scalar_lea.vmem %s736_s9, 256 }
 0x1df   :  { %v625_v45 = vpack.c.bf16 %v608_v3, %v604_v42  ;;  %v627_v49 = vpack.c.bf16 %v610_v57, %v606_v35  ;;  %v589_v17 = vmax.f32 %v551_v33, 0.0  ;;  %v582_v15 = vmax.f32 %v1074_v10, 0.0  ;;  %p794_p0 = scmp.ne.s32.totalorder %s736_s9, %s793_s5  ;;  %p799_p2 = scmp.lt.s32.totalorder %s793_s5, %s793_s5 }
 0x1e0   :  { %v583_v51 = vmax.f32 %v472_v54, 0.0  ;;  %v616_v4 = vpack.c.bf16 %v591_v63, %v587_v20  ;;  %v585_v21 = vmax.f32 %v545_v46, 0.0  ;;  %v613_v26 = vpack.c.bf16 %v584_v7, %v580_v14 }
 0x1e1   :  { %645 = vmatprep.subr.bf16.mxu0 %v625_v45  ;;  %686 = vmatprep.subr.bf16.mxu1 %v627_v49  ;;  %v618_v2 = vpack.c.bf16 %v593_v34, %v589_v17  ;;  %v579_v16 = vmax.f32 %v468_v43, 0.0  ;;  %v615_v22 = vpack.c.bf16 %v586_v32, %v582_v15  ;;  %v581_v23 = vmax.f32 %v541_v36, 0.0  ;;  %p800_p3 = por %p799_p2, %p798_p1 }
 0x1e2   :  { %646 = vmatpush1.bf16.msra.mxu0 %v624_v37  ;;  %687 = vmatpush1.bf16.msra.mxu1 %v626_v6 }
 0x1e3   :  { %647 = vmatprep.subr.bf16.mxu0 %v621_v44  ;;  %688 = vmatprep.subr.bf16.mxu1 %v623_v50  ;;  %v612_v27 = vpack.c.bf16 %v583_v51, %v579_v16  ;;  %v614_v13 = vpack.c.bf16 %v585_v21, %v581_v23  ;;  %p801_p4 = pnand %p800_p3, %p794_p0 }
 0x1e6   :  { %648 = vmatpush1.bf16.msra.mxu0 %v620_v1  ;;  %689 = vmatpush1.bf16.msra.mxu1 %v622_v47 }
 0x1e7   :  { %649 = vmatprep.subr.bf16.mxu0 %v617_v8  ;;  %690 = vmatprep.subr.bf16.mxu1 %v619_v28 }
 0x1ea   :  { %650 = vmatpush1.bf16.msra.mxu0 %v616_v4  ;;  %691 = vmatpush1.bf16.msra.mxu1 %v618_v2 }
 0x1eb   :  { %651 = vmatprep.subr.bf16.mxu0 %v613_v26  ;;  %692 = vmatprep.subr.bf16.mxu1 %v615_v22 }
 0x1ee   :  { %652 = vmatpush1.bf16.msra.mxu0 %v612_v27  ;;  %693 = vmatpush1.bf16.msra.mxu1 %v614_v13 }
 0x1f1   :  { %773 = vmatmul.mubr.msk.bf16.vlgmr.msra.gmra.mxu0 %vm420_vm2, %v611_v38  ;;  %774 = vmatmul.mubr.msk.bf16.vlgmr.msra.gmra.mxu1 %vm420_vm2, %v611_v38 }
 0x2b1   :  { %v671_v10 = vpop.f32.mrf.mxu0  ;;  %v712_v29 = vpop.f32.mrf.mxu1 }
 0x2b2   :  { %v672_v62 = vadd.f32 %v671_v10, %v632_v59  ;;  %v713_v30 = vadd.f32 %v712_v29, %v632_v59 }
 0x2b3   :  { %v673_v61 = vpop.f32.mrf.mxu0  ;;  %v714_v25 = vpop.f32.mrf.mxu1 }
 0x2b4   :  { %v674_v24 = vadd.f32 %v673_v61, %v632_v59  ;;  %v715_v31 = vadd.f32 %v714_v25, %v632_v59 }
 0x2b5   :  { %v675_v40 = vpop.f32.mrf.mxu0  ;;  %v716_v48 = vpop.f32.mrf.mxu1 }
 0x2b6   :  { %v723_v42 = vcombine.low %v672_v62, %v674_v24  ;;  %v724_v3 = vcombine.low %v713_v30, %v715_v31 }
 0x2b7   :  { %v676_v53 = vpop.f32.mrf.mxu0  ;;  %v717_v56 = vpop.f32.mrf.mxu1 }
 0x2b8   :  { %727 = vst [vmem:[#allocation2] sm:$0xff] %v723_v42  ;;  %728 = vst [vmem:[#allocation2 + $0x8] sm:$0xff] %v724_v3 }
 0x2b9   :  { %804 = shalt.err (!%p801_p4)
}
 0x2ba   :  { %738 = dma.vmem_to_hbm [thread:$0]  %s736_s9, 256, %s1133_s7, [#allocation3]  }
 0x2bb   :  { %813 = dma.done.wait [#allocation3], 256  }
 0x2bc   :  { %814 = vsyncadd [#allocation3], 4294967040 }
 0x2bd   :  { %742 = vsyncpa [#allocation3], 1 }

</bundles_post_ra>
